<compile_context>
chip_gen: v5e
topology: v5e:2x2
jax: 0.10.0
libtpu: 0.0.40
codegen_flags: <defaults>
</compile_context>

<pallas_src>
import jax
import jax.numpy as jnp
from jax.experimental import pallas as pl
from jax.experimental.pallas import tpu as pltpu


def _round_up(x, m):
    return ((x + m - 1) // m) * m


def mlp2_kernel(b3_ref, node_ref, flow_ref, w3_ref, w4h_ref, w4f_ref,
                b4_ref, o_ref):
    node_t = node_ref[...]                                  # [in_dim, TB] f32
    flow_t = flow_ref[...]                                  # [L, TB]      f32

    # linear_3 (feature-major): [1, in_dim] @ [in_dim, TB] + b3 -> [1, TB]
    h3 = jnp.dot(w3_ref[...], node_t,
                 preferred_element_type=jnp.float32) + b3_ref[0, 0]

    # relu applied to the (virtual) concat [h3; flow]
    h3_r = jnp.maximum(h3, 0.0)                             # [1, TB]
    flow_r = jnp.maximum(flow_t, 0.0)                       # [L, TB]

    # linear_4 on the split concat (result is lane-dense [5, TB]):
    #   [5,1] * [1,TB]  (VPU broadcast outer product)
    # + [5,L] @ [L,TB]  (MXU, N = TB lane-dense)
    # + b4 [5,1]
    logits = (w4h_ref[...] * h3_r
              + jnp.dot(w4f_ref[...], flow_r,
                        preferred_element_type=jnp.float32)
              + b4_ref[...])                                # [5, TB]

    # softmax over the 5-way (sublane) axis; exact reciprocal for 1e-5 tol.
    m = jnp.max(logits, axis=0, keepdims=True)
    e = jnp.exp(logits - m)
    o_ref[...] = e * pl.reciprocal(jnp.sum(e, axis=0, keepdims=True),
                                   approx=False)


def prepare_params(params):
    """One-time weight prep (hoisted out of the per-forward path)."""
    w3, b3, w4, b4 = params["w3"], params["b3"], params["w4"], params["b4"]
    return {
        "w3": w3,                        # [1, in_dim]  (row vector, as stored)
        "w4_h": w4[:, :1],               # [5, 1]  column for the linear_3 output
        "w4_f": w4[:, 1:],               # [5, L]  columns for flow_feat
        "b3_2d": b3.reshape(1, 1),       # [1, 1]  -> SMEM scalar
        "b4_2d": b4.reshape(5, 1),       # [5, 1]
    }


def mlp2_forward(node_feat, flow_feat, prep):
    """node_feat: [B, in_dim], flow_feat: [B, L]. Returns [B, 5] f32 softmax."""
    B, in_dim = node_feat.shape
    L = flow_feat.shape[1]

    # Feature-major re-layout + pad batch only to the next lane multiple (128).
    B_pad = _round_up(B, 128)
    pad = B_pad - B
    node_t = jnp.pad(node_feat.astype(jnp.float32).T, ((0, 0), (0, pad)))
    flow_t = jnp.pad(flow_feat.astype(jnp.float32).T, ((0, 0), (0, pad)))

    # Large batch tiles (>= ~0.5 MB of traffic per grid step), capped at
    # ~B_pad/2 so v7x's two TensorCores both get grid steps.
    TILE_B = min(4096, max(128, ((B_pad // 2) // 128) * 128))
    grid = (pl.cdiv(B_pad, TILE_B),)

    batch_spec = lambda rows: pl.BlockSpec((rows, TILE_B), lambda i: (0, i))
    resident = lambda shape: pl.BlockSpec(shape, lambda i: (0, 0))

    cost = pl.CostEstimate(
        flops=int(B_pad * (2 * in_dim + 10 * L + 48)),
        transcendentals=int(B_pad * 5),
        bytes_accessed=int(B_pad * (in_dim + L + 5) * 4
                           + (in_dim + 6 * L + 16) * 4),
    )

    out_t = pl.pallas_call(
        mlp2_kernel,
        out_shape=jax.ShapeDtypeStruct((5, B_pad), jnp.float32),
        grid=grid,
        in_specs=[
            pl.BlockSpec(memory_space=pltpu.MemorySpace.SMEM),  # b3 scalar
            batch_spec(in_dim),                                 # node_T
            batch_spec(L),                                      # flow_T
            resident((1, in_dim)),                              # w3
            resident((5, 1)),                                   # w4[:, :1]
            resident((5, L)),                                   # w4[:, 1:]
            resident((5, 1)),                                   # b4
        ],
        out_specs=batch_spec(5),
        compiler_params=pltpu.CompilerParams(
            dimension_semantics=("parallel",),
            vmem_limit_bytes=32 * 1024 * 1024),
        cost_estimate=cost,
    )(prep["b3_2d"], node_t, flow_t, prep["w3"], prep["w4_h"],
      prep["w4_f"], prep["b4_2d"])

    return out_t[:, :B].T


def init_params(key, in_dim, h_dim, L):
    """Deterministic init matching the shapes from MLP2.__init__.
    (linear_1 / linear_2 are unused in forward but initialized for fidelity.)"""
    ks = jax.random.split(key, 8)
    u = lambda k, shape, bound: jax.random.uniform(
        k, shape, jnp.float32, -bound, bound)
    params = {
        # linear_3: Linear(in_dim, 1)
        "w3": u(ks[0], (1, in_dim), 1.0 / jnp.sqrt(in_dim)),
        "b3": u(ks[1], (1,), 1.0 / jnp.sqrt(in_dim)),
        # linear_4: Linear(L + 1, 5)
        "w4": u(ks[2], (5, L + 1), 1.0 / jnp.sqrt(L + 1)),
        "b4": u(ks[3], (5,), 1.0 / jnp.sqrt(L + 1)),
        # unused in forward, kept for shape fidelity
        "w1": u(ks[4], (h_dim, in_dim + L), 1.0 / jnp.sqrt(in_dim + L)),
        "b1": u(ks[5], (h_dim,), 1.0 / jnp.sqrt(in_dim + L)),
        "w2": u(ks[6], (5, h_dim), 1.0 / jnp.sqrt(h_dim)),
        "b2": u(ks[7], (5,), 1.0 / jnp.sqrt(h_dim)),
    }
    return params


def reference_forward(node_feat, flow_feat, params):
    """Pure-JAX reference of the PyTorch forward."""
    flow = flow_feat.astype(jnp.float32)
    h3 = node_feat @ params["w3"].T + params["b3"]          # [B, 1]
    cat = jnp.concatenate([h3, flow], axis=1)               # [B, L+1]
    logits = jnp.maximum(cat, 0.0) @ params["w4"].T + params["b4"]
    return jax.nn.softmax(logits, axis=1)


if __name__ == "__main__":
    in_dim, h_dim, L = 16, 32, 8

    key = jax.random.PRNGKey(0)
    k_node, k_flow, k_param = jax.random.split(key, 3)
    params = init_params(k_param, in_dim, h_dim, L)
    prep = prepare_params(params)   # one-time weight prep (not per call)

    ok = True
    # B=8: single 128-wide tile; B=13: exercises batch lane-padding;
    # B=300: multiple grid steps (B_pad=384, TILE_B=128).
    for B in (8, 13, 300):
        kn, kf = jax.random.split(jax.random.fold_in(key, B))
        node_feat = jax.random.normal(kn, (B, in_dim), jnp.float32)
        flow_feat = jax.random.normal(kf, (B, L), jnp.float32)

        out = mlp2_forward(node_feat, flow_feat, prep)
        out = jax.block_until_ready(out)

        ref = reference_forward(node_feat, flow_feat, params)
        ok = ok and (out.shape == (B, 5))
        ok = ok and bool(jnp.allclose(out, ref, atol=1e-5, rtol=1e-5))
        ok = ok and bool(jnp.allclose(jnp.sum(out, axis=1), 1.0, atol=1e-5))

    assert ok
    print("KERNEL_OK")
</pallas_src>

<mosaic_0001>
module attributes {stable_mosaic.version = 11 : i64} {
  func.func @mlp2_kernel(%arg0: i32, %arg1: memref<1x1xf32, #tpu.memory_space<smem>>, %arg2: memref<16x128xf32, #tpu.memory_space<vmem>>, %arg3: memref<8x128xf32, #tpu.memory_space<vmem>>, %arg4: memref<1x16xf32, #tpu.memory_space<vmem>>, %arg5: memref<5x1xf32, #tpu.memory_space<vmem>>, %arg6: memref<5x8xf32, #tpu.memory_space<vmem>>, %arg7: memref<5x1xf32, #tpu.memory_space<vmem>>, %arg8: memref<5x128xf32, #tpu.memory_space<vmem>>) attributes {dimension_semantics = [#tpu.dimension_semantics<parallel>], iteration_bounds = array<i64: 1>, scalar_prefetch = 0 : i64, scratch_operands = 0 : i64, tpu.core_type = #tpu.core_type<tc>, window_params = [{transform_indices = @transform_0, window_bounds = array<i64: 1, 1>}, {transform_indices = @transform_1, window_bounds = array<i64: 16, 128>}, {transform_indices = @transform_2, window_bounds = array<i64: 8, 128>}, {pipeline_mode = #tpu.pipeline_mode<synchronous>, transform_indices = @transform_3, window_bounds = array<i64: 1, 16>}, {pipeline_mode = #tpu.pipeline_mode<synchronous>, transform_indices = @transform_4, window_bounds = array<i64: 5, 1>}, {pipeline_mode = #tpu.pipeline_mode<synchronous>, transform_indices = @transform_5, window_bounds = array<i64: 5, 8>}, {pipeline_mode = #tpu.pipeline_mode<synchronous>, transform_indices = @transform_6, window_bounds = array<i64: 5, 1>}, {transform_indices = @transform_7, window_bounds = array<i64: 5, 128>}]} {
    %c0 = arith.constant 0 : index
    %c0_0 = arith.constant 0 : index
    %0 = vector.load %arg2[%c0, %c0_0] : memref<16x128xf32, #tpu.memory_space<vmem>>, vector<16x128xf32>
    %c0_1 = arith.constant 0 : index
    %c0_2 = arith.constant 0 : index
    %1 = vector.load %arg3[%c0_1, %c0_2] : memref<8x128xf32, #tpu.memory_space<vmem>>, vector<8x128xf32>
    %c0_3 = arith.constant 0 : index
    %c0_4 = arith.constant 0 : index
    %2 = vector.load %arg4[%c0_3, %c0_4] : memref<1x16xf32, #tpu.memory_space<vmem>>, vector<1x16xf32>
    %cst = arith.constant dense<0.000000e+00> : vector<1x128xf32>
    %3 = tpu.matmul %2, %0, %cst {dimension_numbers = #tpu.dot_dimension_numbers<[1], [0], [0], [1], [0, 0, 1, 1], [], []>} : vector<1x16xf32>, vector<16x128xf32>, vector<1x128xf32> -> vector<1x128xf32>
    %c0_5 = arith.constant 0 : index
    %c0_6 = arith.constant 0 : index
    %4 = memref.load %arg1[%c0_5, %c0_6] : memref<1x1xf32, #tpu.memory_space<smem>>
    %5 = vector.broadcast %4 : f32 to vector<1x128xf32>
    %6 = arith.addf %3, %5 : vector<1x128xf32>
    %cst_7 = arith.constant 0.000000e+00 : f32
    %7 = vector.broadcast %cst_7 : f32 to vector<1x128xf32>
    %8 = arith.maximumf %6, %7 : vector<1x128xf32>
    %cst_8 = arith.constant 0.000000e+00 : f32
    %9 = vector.broadcast %cst_8 : f32 to vector<8x128xf32>
    %10 = arith.maximumf %1, %9 : vector<8x128xf32>
    %c0_9 = arith.constant 0 : index
    %c0_10 = arith.constant 0 : index
    %11 = vector.load %arg5[%c0_9, %c0_10] : memref<5x1xf32, #tpu.memory_space<vmem>>, vector<5x1xf32>
    %12 = vector.broadcast %11 : vector<5x1xf32> to vector<5x128xf32>
    %13 = vector.broadcast %8 : vector<1x128xf32> to vector<5x128xf32>
    %14 = arith.mulf %12, %13 : vector<5x128xf32>
    %c0_11 = arith.constant 0 : index
    %c0_12 = arith.constant 0 : index
    %15 = vector.load %arg6[%c0_11, %c0_12] : memref<5x8xf32, #tpu.memory_space<vmem>>, vector<5x8xf32>
    %cst_13 = arith.constant dense<0.000000e+00> : vector<5x128xf32>
    %16 = tpu.matmul %15, %10, %cst_13 {dimension_numbers = #tpu.dot_dimension_numbers<[1], [0], [0], [1], [0, 0, 1, 1], [], []>} : vector<5x8xf32>, vector<8x128xf32>, vector<5x128xf32> -> vector<5x128xf32>
    %17 = arith.addf %14, %16 : vector<5x128xf32>
    %c0_14 = arith.constant 0 : index
    %c0_15 = arith.constant 0 : index
    %18 = vector.load %arg7[%c0_14, %c0_15] : memref<5x1xf32, #tpu.memory_space<vmem>>, vector<5x1xf32>
    %19 = vector.broadcast %18 : vector<5x1xf32> to vector<5x128xf32>
    %20 = arith.addf %17, %19 : vector<5x128xf32>
    %cst_16 = arith.constant dense<0xFF800000> : vector<128xf32>
    %21 = vector.multi_reduction <maximumf>, %20, %cst_16 [0] : vector<5x128xf32> to vector<128xf32>
    %22 = vector.shape_cast %21 : vector<128xf32> to vector<1x128xf32>
    %23 = vector.broadcast %22 : vector<1x128xf32> to vector<5x128xf32>
    %24 = arith.subf %20, %23 : vector<5x128xf32>
    %25 = math.exp %24 : vector<5x128xf32>
    %cst_17 = arith.constant dense<0.000000e+00> : vector<128xf32>
    %26 = vector.multi_reduction <add>, %25, %cst_17 [0] : vector<5x128xf32> to vector<128xf32>
    %27 = vector.shape_cast %26 : vector<128xf32> to vector<1x128xf32>
    %28 = tpu.reciprocal %27 : vector<1x128xf32> -> vector<1x128xf32>
    %29 = vector.broadcast %28 : vector<1x128xf32> to vector<5x128xf32>
    %30 = arith.mulf %25, %29 : vector<5x128xf32>
    %c0_18 = arith.constant 0 : index
    %c0_19 = arith.constant 0 : index
    %31 = vector.load %arg8[%c0_18, %c0_19] : memref<5x128xf32, #tpu.memory_space<vmem>>, vector<5x128xf32>
    tpu.vector_store %arg8[%c0_18, %c0_19], %30 {strides = array<i32>} : memref<5x128xf32, #tpu.memory_space<vmem>>, vector<5x128xf32>,
    return
  }
  func.func @transform_0(%arg0: i32) -> (i32, i32) {
    %c0_i32 = arith.constant 0 : i32
    %c0_i32_0 = arith.constant 0 : i32
    %c0_i32_1 = arith.constant 0 : i32
    return %c0_i32, %c0_i32_0 : i32, i32
  }
  func.func @transform_1(%arg0: i32) -> (i32, i32) {
    %c0_i32 = arith.constant 0 : i32
    %c0_i32_0 = arith.constant 0 : i32
    return %c0_i32, %arg0 : i32, i32
  }
  func.func @transform_2(%arg0: i32) -> (i32, i32) {
    %c0_i32 = arith.constant 0 : i32
    %c0_i32_0 = arith.constant 0 : i32
    return %c0_i32, %arg0 : i32, i32
  }
  func.func @transform_3(%arg0: i32) -> (i32, i32) {
    %c0_i32 = arith.constant 0 : i32
    %c0_i32_0 = arith.constant 0 : i32
    %c0_i32_1 = arith.constant 0 : i32
    return %c0_i32, %c0_i32_0 : i32, i32
  }
  func.func @transform_4(%arg0: i32) -> (i32, i32) {
    %c0_i32 = arith.constant 0 : i32
    %c0_i32_0 = arith.constant 0 : i32
    %c0_i32_1 = arith.constant 0 : i32
    return %c0_i32, %c0_i32_0 : i32, i32
  }
  func.func @transform_5(%arg0: i32) -> (i32, i32) {
    %c0_i32 = arith.constant 0 : i32
    %c0_i32_0 = arith.constant 0 : i32
    %c0_i32_1 = arith.constant 0 : i32
    return %c0_i32, %c0_i32_0 : i32, i32
  }
  func.func @transform_6(%arg0: i32) -> (i32, i32) {
    %c0_i32 = arith.constant 0 : i32
    %c0_i32_0 = arith.constant 0 : i32
    %c0_i32_1 = arith.constant 0 : i32
    return %c0_i32, %c0_i32_0 : i32, i32
  }
  func.func @transform_7(%arg0: i32) -> (i32, i32) {
    %c0_i32 = arith.constant 0 : i32
    %c0_i32_0 = arith.constant 0 : i32
    return %c0_i32, %arg0 : i32, i32
  }
}

</mosaic_0001>

<bundles_post_ra>
// kernel: tpu_custom_call.1
= control target key start
LH: loop header
LB: loop body
LE: loop exit
PB: predicated region body
PF: predicated region fallthrough
CT: control target
= control target key end

     0   :  { %13 = vsyncpa [#allocation4], 0  ;;  %s341_s0 = inlined_call_operand.<no memory space> [shape: f32[1,1], index: 0, kind: input, shape index: {}]   ;;  %s342_s1 = inlined_call_operand.vmem [shape: f32[16,128], index: 1, kind: input, shape index: {}]   ;;  %s343_s2 = inlined_call_operand.hbm [shape: f32[8,128], index: 2, kind: input, shape index: {}]   ;;  %s344_s3 = inlined_call_operand.vmem [shape: f32[1,16], index: 3, kind: input, shape index: {}]   ;;  %s345_s4 = inlined_call_operand.vmem [shape: f32[5,1], index: 4, kind: input, shape index: {}]   ;;  %s346_s5 = inlined_call_operand.hbm [shape: f32[5,8], index: 5, kind: input, shape index: {}]   ;;  %s347_s6 = inlined_call_operand.vmem [shape: f32[5,1], index: 6, kind: input, shape index: {}]   ;;  %s348_s7 = inlined_call_operand.hbm [shape: f32[5,128], index: 7, kind: output, shape index: {}]  }
   0x1   :  { %14 = vsyncpa [#allocation7], 0 }
   0x2   :  { %15 = vsyncpa [#allocation5], 0  ;;  %s25_s26 = sshll.u32 %s343_s2, 4  ;;  %s270_s27 = smov [#allocation3]   ;;  %s26_s26 = int_to_ptr.hbm [resolvable:$true] %s25_s26 }
   0x3   :  { %s27_s28 = sshll.u32 %s270_s27, 4  ;;  %s40_s8 = sshll.u32 %s346_s5, 4  ;;  %s28_s28 = int_to_ptr.vmem [resolvable:$true] %s27_s28  ;;  %s41_s8 = int_to_ptr.hbm [resolvable:$true] %s40_s8 }
   0x4   :  { %30 = dma.hbm_to_vmem [thread:$0]  %s26_s26, 128, %s28_s28, [#allocation4]  }
   0x5   :  { %s271_s9 = smov [#allocation6]  }
   0x6   :  { %s42_s10 = sshll.u32 %s271_s9, 4  ;;  %s43_s10 = int_to_ptr.vmem [resolvable:$true] %s42_s10 }
   0x7   :  { %45 = dma.hbm_to_vmem [thread:$0]  %s41_s8, 128, %s43_s10, [#allocation7]  }
   0x8   :  { %264 = dma.done.wait [#allocation4], 128  }
   0x9   :  { %265 = vsyncadd [#allocation4], 4294967168 }
   0xa   :  { %266 = dma.done.wait [#allocation7], 128  }
   0xb   :  { %267 = vsyncadd [#allocation7], 4294967168  ;;  %v272_v0 = vmov 0   ;;  %v57_v1 = vld [vmem:[%s342_s1 + $0x8] sm:$0xff]  ;;  %v56_v2 = vld [vmem:[%s342_s1] sm:$0xff]  ;;  %vm62_vm0 = vcmask 130048   ;;  %v61_v9 = vstv %s341_s0 }
   0xc   :  { %187 = vset.pattern.permute.xlu0 %v272_v0  ;;  %80 = vmatpush.msra.mxu0 %v57_v1  ;;  %v59_v3 = vld [vmem:[%s344_s3] sm:$0x1]  ;;  %v96_v7 = vld [vmem:[#allocation6] sm:$0x1f]  ;;  %vm97_vm1 = vcmask 64512   ;;  %vm129_vm2 = vcmask 1044480  }
   0xd   :  { %v88_v4 = vld [vmem:[%s345_s4] sm:$0x1f]  ;;  %s273_s0 = smov [#allocation8]   ;;  %s170_s20 = sshll.u32 %s348_s7, 4  ;;  %s171_s20 = int_to_ptr.hbm [resolvable:$true] %s170_s20 }
   0xe   :  { %v58_v5 = vld [vmem:[#allocation3] sm:$0xff]  ;;  %91 = vperm.xlu0 %187, %v88_v4   ;;  %81 = vmatpush.msra.mxu0 %v56_v2  ;;  %s168_s4 = sshll.u32 %s273_s0, 4  ;;  %s169_s4 = int_to_ptr.vmem [resolvable:$true] %s168_s4 }
   0xf   :  { %v87_v6 = vmax.f32 %v58_v5, 0.0  ;;  %181 = vmatmul.msk.f32.vlgmr.msra.gmra.mxu0 %vm62_vm0, %v59_v3  ;;  %v122_v8 = vld [vmem:[%s347_s6] sm:$0x1f] }
  0x11   :  { %116 = vmatpush.msra.mxu1 %v87_v6 }
  0x12   :  { %182 = vmatmul.msk.f32.vlgmr.msra.gmra.mxu1 %vm97_vm1, %v96_v7 }
  0x16   :  { %125 = vperm.xlu0 %187, %v122_v8  }
  0x80   :  { %v92_v10 = vpop.permute.xlu0 %91 }
  0x88   :  { %v126_v18 = vpop.permute.xlu0 %125 }
  0x8c   :  { %v83_v11 = vpop.f32.mrf.mxu0 }
  0x8d   :  { %v84_v12 = vadd.f32 %v83_v11, %v61_v9 }
  0x8f   :  { %v86_v13 = vmax.f32 %v84_v12, 0.0  ;;  %v118_v15 = vpop.f32.mrf.mxu1 }
  0x91   :  { %v94_v14 = vperm.slane %v86_v13, 0 }
  0x93   :  { %v95_v16 = vmul.f32 %v94_v14, %v92_v10 }
  0x95   :  { %v121_v17 = vadd.f32 %v118_v15, %v95_v16 }
  0x97   :  { %v128_v19 = vadd.f32 %v126_v18, %v121_v17 }
  0x99   :  { %v130_v20 = vsel %vm129_vm2, %v128_v19, -inf }
  0x9a   :  { %v131_v21 = vrot.slane %v130_v20, 4 }
  0x9c   :  { %v132_v22 = vmax.f32 %v130_v20, %v131_v21 }
  0x9e   :  { %v133_v23 = vrot.slane %v132_v22, 2 }
  0xa0   :  { %v134_v24 = vmax.f32 %v132_v22, %v133_v23 }
  0xa2   :  { %v135_v25 = vrot.slane %v134_v24, 1 }
  0xa4   :  { %v136_v26 = vmax.f32 %v134_v24, %v135_v25 }
  0xa6   :  { %v137_v27 = vsub.f32 %v128_v19, %v136_v26 }
  0xa8   :  { %v138_v28 = vmul.f32 1.442695, %v137_v27 }
  0xaa   :  { %188 = vpow2.f32 %v138_v28 }
  0xb0   :  { %v189_v29 = vpop.eup %188 }
  0xb1   :  { %v140_v30 = vsel %vm129_vm2, %v189_v29, 0.0 }
  0xb2   :  { %v141_v31 = vrot.slane %v140_v30, 4 }
  0xb4   :  { %v142_v32 = vadd.f32 %v141_v31, %v140_v30 }
  0xb6   :  { %v143_v33 = vrot.slane %v142_v32, 2 }
  0xb8   :  { %v144_v34 = vadd.f32 %v143_v33, %v142_v32 }
  0xba   :  { %v145_v35 = vrot.slane %v144_v34, 1 }
  0xbc   :  { %v146_v36 = vadd.f32 %v145_v35, %v144_v34 }
  0xbe   :  { %190 = vrcp.f32 %v146_v36  ;;  %v158_v40 = vand.u32 2147483648, %v146_v36  ;;  %v156_v42 = vand.u32 2147483647, %v146_v36  ;;  %vm152_vm4 = vweird.f32 %v146_v36 }
  0xc0   :  { %v159_v44 = vor.u32 1.1754944e-38, %v158_v40  ;;  %vm157_vm6 = vcmp.eq.f32.partialorder %v156_v42, 8.507059e+37 }
  0xc4   :  { %v191_v37 = vpop.eup %190 }
  0xc5   :  { %v148_v38 = vmul.f32 %v191_v37, %v146_v36  ;;  %vm153_vm3 = vweird.f32 %v191_v37 }
  0xc6   :  { %vm154_vm5 = vmor %vm152_vm4, %vm153_vm3 }
  0xc7   :  { %v149_v39 = vsub.f32 1.0, %v148_v38 }
  0xc9   :  { %v150_v41 = vmul.f32 %v191_v37, %v149_v39 }
  0xcb   :  { %v151_v43 = vadd.f32 %v191_v37, %v150_v41 }
  0xcd   :  { %v155_v45 = vsel %vm154_vm5, %v191_v37, %v151_v43 }
  0xce   :  { %v160_v46 = vsel %vm157_vm6, %v159_v44, %v155_v45 }
  0xcf   :  { %v161_v47 = vmul.f32 %v189_v29, %v160_v46 }
  0xd1   :  { %162 = vst [vmem:[#allocation8] sm:$0x1f] %v161_v47 }
  0xd2   :  { %173 = dma.vmem_to_hbm [thread:$0]  %s169_s4, 128, %s171_s20, [#allocation5]  }
  0xd3   :  { %268 = dma.done.wait [#allocation5], 128  }
  0xd4   :  { %269 = vsyncadd [#allocation5], 4294967168 }
  0xd5   :  { %178 = vsyncpa [#allocation4], 1 }
  0xd6   :  { %179 = vsyncpa [#allocation7], 1 }
  0xd7   :  { %180 = vsyncpa [#allocation5], 1 }

</bundles_post_ra>
